<compile_context>
chip_gen: v5e
topology: v5e:2x2
jax: 0.10.0
libtpu: 0.0.40
codegen_flags: <defaults>
</compile_context>

<pallas_src>
import math

import jax
import jax.numpy as jnp
from jax.experimental import pallas as pl
from jax.experimental.pallas import tpu as pltpu


_C1 = math.sqrt(2.0 / math.pi)          # sqrt(2/pi)
_C2 = 0.044715 * _C1                    # folded: sqrt(2/pi) * 0.044715


def _gelu_kernel(x_ref, o_ref):
    x = x_ref[...].astype(jnp.float32)
    # inner = sqrt(2/pi) * (x + 0.044715 * x^3) = x * (c1 + c2 * x * x)
    inner = x * (jnp.float32(_C1) + jnp.float32(_C2) * x * x)
    # 0.5 * x * (1 + tanh(inner)) = x * (0.5 + 0.5 * tanh(inner))
    y = x * (jnp.float32(0.5) + jnp.float32(0.5) * jnp.tanh(inner))
    o_ref[...] = y.astype(o_ref.dtype)


def gelu_pallas(x: jax.Array, block_bytes: int = 6 * 1024 * 1024) -> jax.Array:
    """Tanh-approx GELU, same semantics as the PyTorch module's forward."""
    orig_shape = x.shape
    H = orig_shape[-1]

    # Flatten all leading dims into a row axis.
    x2 = x.reshape(-1, H)
    N = x2.shape[0]

    itemsize = jnp.dtype(x.dtype).itemsize
    # Sublane packing: 8 rows for 32-bit, 16 for bf16, 32 for 8-bit dtypes.
    sub = max(8, 32 // itemsize)

    # Byte-budget based row tile: ~block_bytes per block, rounded to a sublane
    # multiple, never larger than the (sublane-rounded) row count.
    rows_budget = max(sub, block_bytes // max(1, H * itemsize))
    tile = min(rows_budget, ((N + sub - 1) // sub) * sub)
    tile = max(sub, (tile // sub) * sub)

    grid = (pl.cdiv(N, tile),)   # ragged last block handled by Pallas masking

    out2 = pl.pallas_call(
        _gelu_kernel,
        out_shape=jax.ShapeDtypeStruct((N, H), x.dtype),
        grid_spec=pltpu.PrefetchScalarGridSpec(
            num_scalar_prefetch=0,
            grid=grid,
            in_specs=[pl.BlockSpec((tile, H), lambda i: (i, 0))],
            out_specs=pl.BlockSpec((tile, H), lambda i: (i, 0)),
        ),
        compiler_params=pltpu.CompilerParams(
            dimension_semantics=("parallel",),
            # ~24 MiB of double-buffered in+out at the 6 MiB block budget;
            # 32 MiB is within every generation's physical VMEM (incl. v7x)
            # and lifts v5e's 16 MiB default scoped limit.
            vmem_limit_bytes=32 * 1024 * 1024,
        ),
        cost_estimate=pl.CostEstimate(
            flops=8 * N * H,
            transcendentals=N * H,
            bytes_accessed=2 * N * H * itemsize,
        ),
    )(x2)

    return out2.reshape(orig_shape)


def gelu_ref(x: jax.Array) -> jax.Array:
    orig_dtype = x.dtype
    xf = x.astype(jnp.float32)
    c = jnp.float32(math.sqrt(2.0 / math.pi))
    y = 0.5 * xf * (1.0 + jnp.tanh(c * (xf + 0.044715 * xf**3)))
    return y.astype(orig_dtype)


if __name__ == "__main__":
    key = jax.random.PRNGKey(0)
    # Same shape convention as the PyTorch snippet: torch.rand(2, 3, 768)
    x = jax.random.uniform(key, (2, 3, 768), dtype=jnp.float32)

    out = gelu_pallas(x)
    jax.block_until_ready(out)

    ref = gelu_ref(x)
    assert out.shape == x.shape and out.dtype == x.dtype
    assert jnp.allclose(out, ref, atol=1e-5, rtol=1e-5)

    # Exercise the ragged-last-block path (N = 35 rows, not a sublane multiple).
    x_ragged = jax.random.normal(jax.random.PRNGKey(1), (5, 7, 768), dtype=jnp.float32)
    out_ragged = gelu_pallas(x_ragged)
    jax.block_until_ready(out_ragged)
    assert jnp.allclose(out_ragged, gelu_ref(x_ragged), atol=1e-5, rtol=1e-5)

    print("KERNEL_OK")
</pallas_src>

<mosaic_0001>
module attributes {stable_mosaic.version = 11 : i64} {
  func.func @_gelu_kernel(%arg0: i32, %arg1: memref<8x768xf32, #tpu.memory_space<vmem>>, %arg2: memref<8x768xf32, #tpu.memory_space<vmem>>) attributes {dimension_semantics = [#tpu.dimension_semantics<parallel>], iteration_bounds = array<i64: 1>, scalar_prefetch = 0 : i64, scratch_operands = 0 : i64, tpu.core_type = #tpu.core_type<tc>, window_params = [{transform_indices = @transform_0, window_bounds = array<i64: 8, 768>}, {transform_indices = @transform_1, window_bounds = array<i64: 8, 768>}]} {
    %c0 = arith.constant 0 : index
    %c0_0 = arith.constant 0 : index
    %0 = vector.load %arg1[%c0, %c0_0] : memref<8x768xf32, #tpu.memory_space<vmem>>, vector<8x768xf32>
    %cst = arith.constant 0.0356774069 : f32
    %1 = vector.broadcast %cst : f32 to vector<8x768xf32>
    %2 = arith.mulf %1, %0 : vector<8x768xf32>
    %3 = arith.mulf %2, %0 : vector<8x768xf32>
    %cst_1 = arith.constant 0.797884583 : f32
    %4 = vector.broadcast %cst_1 : f32 to vector<8x768xf32>
    %5 = arith.addf %4, %3 : vector<8x768xf32>
    %6 = arith.mulf %0, %5 : vector<8x768xf32>
    %7 = math.tanh %6 : vector<8x768xf32>
    %cst_2 = arith.constant 5.000000e-01 : f32
    %8 = vector.broadcast %cst_2 : f32 to vector<8x768xf32>
    %9 = arith.mulf %8, %7 : vector<8x768xf32>
    %cst_3 = arith.constant 5.000000e-01 : f32
    %10 = vector.broadcast %cst_3 : f32 to vector<8x768xf32>
    %11 = arith.addf %10, %9 : vector<8x768xf32>
    %12 = arith.mulf %0, %11 : vector<8x768xf32>
    %c0_4 = arith.constant 0 : index
    %c0_5 = arith.constant 0 : index
    %13 = vector.load %arg2[%c0_4, %c0_5] : memref<8x768xf32, #tpu.memory_space<vmem>>, vector<8x768xf32>
    tpu.vector_store %arg2[%c0_4, %c0_5], %12 {strides = array<i32>} : memref<8x768xf32, #tpu.memory_space<vmem>>, vector<8x768xf32>,
    return
  }
  func.func @transform_0(%arg0: i32) -> (i32, i32) {
    %c0_i32 = arith.constant 0 : i32
    %c0_i32_0 = arith.constant 0 : i32
    return %arg0, %c0_i32 : i32, i32
  }
  func.func @transform_1(%arg0: i32) -> (i32, i32) {
    %c0_i32 = arith.constant 0 : i32
    %c0_i32_0 = arith.constant 0 : i32
    return %arg0, %c0_i32 : i32, i32
  }
}

</mosaic_0001>

<bundles_post_ra>
// kernel: tpu_custom_call.1
= control target key start
LH: loop header
LB: loop body
LE: loop exit
PB: predicated region body
PF: predicated region fallthrough
CT: control target
= control target key end

     0   :  { %6 = vsyncpa [#allocation3], 0  ;;  %s184_s0 = inlined_call_operand.hbm [shape: f32[6,768], index: 0, kind: input, shape index: {}]   ;;  %s185_s1 = inlined_call_operand.hbm [shape: f32[6,768], index: 1, kind: output, shape index: {}]  }
   0x1   :  { %7 = vsyncpa [#allocation4], 0  ;;  %s13_s8 = sshll.u32 %s184_s0, 4  ;;  %s166_s9 = smov [#allocation2]   ;;  %s14_s8 = int_to_ptr.hbm [resolvable:$true] %s13_s8 }
   0x2   :  { %s15_s10 = sshll.u32 %s166_s9, 4  ;;  %s16_s10 = int_to_ptr.vmem [resolvable:$true] %s15_s10 }
   0x3   :  { %18 = dma.hbm_to_vmem [thread:$0]  %s14_s8, 768, %s16_s10, [#allocation3]  }
   0x4   :  { %162 = dma.done.wait [#allocation3], 768  }
   0x5   :  { %163 = vsyncadd [#allocation3], 4294966528  ;;  %v23_v0 = vld [vmem:[#allocation2] sm:$0xff]  ;;  %v24_v1 = vld [vmem:[#allocation2 + $0x8] sm:$0xff]  ;;  %s167_s0 = smov [#allocation5]   ;;  %s90_s14 = sshll.u32 %s185_s1, 4  ;;  %s91_s14 = int_to_ptr.hbm [resolvable:$true] %s90_s14 }
   0x6   :  { %v25_v2 = vld [vmem:[#allocation2 + $0x10] sm:$0xff]  ;;  %v29_v3 = vmul.f32 0.035677407, %v23_v0  ;;  %v30_v4 = vmul.f32 0.035677407, %v24_v1  ;;  %v26_v6 = vld [vmem:[#allocation2 + $0x18] sm:$0xff] }
   0x7   :  { %v31_v5 = vmul.f32 0.035677407, %v25_v2  ;;  %v27_v7 = vld [vmem:[#allocation2 + $0x20] sm:$0xff]  ;;  %v28_v8 = vld [vmem:[#allocation2 + $0x28] sm:$0xff]  ;;  %v32_v12 = vmul.f32 0.035677407, %v26_v6 }
   0x8   :  { %v35_v9 = vmul.f32 %v29_v3, %v23_v0  ;;  %v36_v10 = vmul.f32 %v30_v4, %v24_v1  ;;  %v33_v13 = vmul.f32 0.035677407, %v27_v7  ;;  %v34_v14 = vmul.f32 0.035677407, %v28_v8  ;;  %s88_s11 = sshll.u32 %s167_s0, 4  ;;  %s89_s11 = int_to_ptr.vmem [resolvable:$true] %s88_s11 }
   0x9   :  { %v37_v11 = vmul.f32 %v31_v5, %v25_v2  ;;  %v38_v18 = vmul.f32 %v32_v12, %v26_v6 }
   0xa   :  { %v41_v15 = vadd.f32 0.7978846, %v35_v9  ;;  %v42_v16 = vadd.f32 0.7978846, %v36_v10  ;;  %v39_v19 = vmul.f32 %v33_v13, %v27_v7  ;;  %v40_v20 = vmul.f32 %v34_v14, %v28_v8 }
   0xb   :  { %v43_v17 = vadd.f32 0.7978846, %v37_v11  ;;  %v44_v24 = vadd.f32 0.7978846, %v38_v18 }
   0xc   :  { %v47_v21 = vmul.f32 %v41_v15, %v23_v0  ;;  %v48_v22 = vmul.f32 %v42_v16, %v24_v1  ;;  %v45_v25 = vadd.f32 0.7978846, %v39_v19  ;;  %v46_v26 = vadd.f32 0.7978846, %v40_v20 }
   0xd   :  { %v49_v23 = vmul.f32 %v43_v17, %v25_v2  ;;  %v50_v27 = vmul.f32 %v44_v24, %v26_v6 }
   0xe   :  { %102 = vtanh.f32 %v47_v21  ;;  %v51_v28 = vmul.f32 %v45_v25, %v27_v7  ;;  %v52_v29 = vmul.f32 %v46_v26, %v28_v8 }
   0xf   :  { %104 = vtanh.f32 %v48_v22 }
  0x10   :  { %106 = vtanh.f32 %v49_v23 }
  0x11   :  { %108 = vtanh.f32 %v50_v27 }
  0x12   :  { %110 = vtanh.f32 %v51_v28 }
  0x13   :  { %112 = vtanh.f32 %v52_v29 }
  0x14   :  { %v103_v30 = vpop.eup %102 }
  0x15   :  { %v105_v31 = vpop.eup %104  ;;  %v59_v32 = vmul.f32 0.5, %v103_v30 }
  0x16   :  { %v107_v33 = vpop.eup %106  ;;  %v60_v34 = vmul.f32 0.5, %v105_v31 }
  0x17   :  { %v109_v35 = vpop.eup %108  ;;  %v65_v36 = vadd.f32 0.5, %v59_v32  ;;  %v61_v37 = vmul.f32 0.5, %v107_v33 }
  0x18   :  { %v111_v38 = vpop.eup %110  ;;  %v66_v39 = vadd.f32 0.5, %v60_v34  ;;  %v62_v40 = vmul.f32 0.5, %v109_v35 }
  0x19   :  { %v113_v41 = vpop.eup %112  ;;  %v71_v42 = vmul.f32 %v65_v36, %v23_v0  ;;  %v67_v43 = vadd.f32 0.5, %v61_v37  ;;  %v63_v44 = vmul.f32 0.5, %v111_v38 }
  0x1a   :  { %v72_v45 = vmul.f32 %v66_v39, %v24_v1  ;;  %v68_v46 = vadd.f32 0.5, %v62_v40  ;;  %v64_v47 = vmul.f32 0.5, %v113_v41 }
  0x1b   :  { %77 = vst [vmem:[#allocation5] sm:$0xff] %v71_v42  ;;  %v73_v48 = vmul.f32 %v67_v43, %v25_v2  ;;  %v69_v49 = vadd.f32 0.5, %v63_v44 }
  0x1c   :  { %78 = vst [vmem:[#allocation5 + $0x8] sm:$0xff] %v72_v45  ;;  %v74_v50 = vmul.f32 %v68_v46, %v26_v6  ;;  %v70_v51 = vadd.f32 0.5, %v64_v47 }
  0x1d   :  { %79 = vst [vmem:[#allocation5 + $0x10] sm:$0xff] %v73_v48  ;;  %v75_v52 = vmul.f32 %v69_v49, %v27_v7 }
  0x1e   :  { %80 = vst [vmem:[#allocation5 + $0x18] sm:$0xff] %v74_v50  ;;  %v76_v53 = vmul.f32 %v70_v51, %v28_v8 }
  0x1f   :  { %81 = vst [vmem:[#allocation5 + $0x20] sm:$0xff] %v75_v52 }
  0x20   :  { %82 = vst [vmem:[#allocation5 + $0x28] sm:$0xff] %v76_v53 }
  0x21   :  { %93 = dma.vmem_to_hbm [thread:$0]  %s89_s11, 768, %s91_s14, [#allocation4]  }
  0x22   :  { %164 = dma.done.wait [#allocation4], 768  }
  0x23   :  { %165 = vsyncadd [#allocation4], 4294966528 }
  0x24   :  { %98 = vsyncpa [#allocation3], 1 }
  0x25   :  { %99 = vsyncpa [#allocation4], 1 }

</bundles_post_ra>
